<compile_context>
chip_gen: v7x
topology: tpu7x:2x2x1
jax: 0.10.0
libtpu: 0.0.40
codegen_flags: <defaults>
</compile_context>

<pallas_src>
import jax
import jax.numpy as jnp
from jax.experimental import pallas as pl
from jax.experimental.pallas import tpu as pltpu


# TODO(synk): the exact phi_s<k> penalty derivatives live outside the provided module
# (selected via eval); deterministic surrogates used: convex "fair" and nonconvex Cauchy.
def _phi_cvx_from_t(u, t):
    # u / sqrt(1 + (u/delta)^2), with t = u/delta precomputed (no per-element divide)
    return u * jax.lax.rsqrt(1.0 + t * t)


def _phi_ncvx_from_t(u, t):
    # u / (1 + (u/delta)^2) -> EUP approximate reciprocal instead of a VPU divide
    return u * pl.reciprocal(1.0 + t * t, approx=True)


def _mm_iter_kernel(inv_delta_ref,        # SMEM f32[2] (scalar prefetch): [1/d_cvx, 1/d_ncvx]
                    x_ref, hty_ref,       # VMEM f32 [TB, n]
                    w1_ref, w2_ref,       # VMEM bf16 [n, n]   (PyTorch (n_out, n_in) layout)
                    w3_ref,               # VMEM bf16 [n, 3n]
                    wm_ref,               # VMEM bf16 [n, n]
                    out_ref):             # VMEM f32 [TB, n]
    inv_d_cvx = inv_delta_ref[0]
    inv_d_ncvx = inv_delta_ref[1]

    x = x_ref[...]                        # keep the residual path in f32
    x_bf = x.astype(jnp.bfloat16)

    # nn.Linear contracts on the weight's n_in axis (axis 1) -> no transposes anywhere.
    dn = (((1,), (1,)), ((), ()))

    # first_branch = V1(x) - Ht_x_degraded   (Identity n() is a no-op)
    first = jax.lax.dot_general(x_bf, w1_ref[...], dn,
                                preferred_element_type=jnp.float32) - hty_ref[...]

    # V2(x), then the two penalization branches (f32 elementwise, EUP rsqrt/recip).
    v2 = jax.lax.dot_general(x_bf, w2_ref[...], dn,
                             preferred_element_type=jnp.float32)
    b_cvx = _phi_cvx_from_t(v2, v2 * inv_d_cvx)
    b_ncvx = _phi_ncvx_from_t(v2, v2 * inv_d_ncvx)

    # glob = V3(cat([first, b_cvx, b_ncvx], dim=1)) -- single fused [TB,3n]x[3n,n] matmul
    cat = jnp.concatenate([first, b_cvx, b_ncvx], axis=-1).astype(jnp.bfloat16)
    glob = jax.lax.dot_general(cat, w3_ref[...], dn,
                               preferred_element_type=jnp.float32)

    # glob = mat(glob)
    glob = jax.lax.dot_general(glob.astype(jnp.bfloat16), wm_ref[...], dn,
                               preferred_element_type=jnp.float32)

    # x_{k+1} = x - glob
    out_ref[...] = x - glob


def block_forward(x, ht_x_degraded, V1, V2, V3, mat_w,
                  delta_s_cvx, delta_s_ncvx, *, tile_b=8):
    """One Block/Iter step (mode='MM'). Weights given in PyTorch (n_out, n_in) layout."""
    x = x.astype(jnp.float32)
    ht_x_degraded = ht_x_degraded.astype(jnp.float32)
    B, n = x.shape
    assert V1.shape == (n, n) and V2.shape == (n, n)
    assert V3.shape == (n, 3 * n) and mat_w.shape == (n, n)

    # Weights stay in PyTorch layout (no HBM transposes); bf16 for the MXU.
    # TODO(synk): hoist these casts out of the per-Block path when used in an unrolled net.
    w1 = V1.astype(jnp.bfloat16)
    w2 = V2.astype(jnp.bfloat16)
    w3 = V3.astype(jnp.bfloat16)
    wm = mat_w.astype(jnp.bfloat16)

    # TODO(synk): no guard for delta == 0 (matches the original module's behavior).
    inv_deltas = jnp.array([1.0 / delta_s_cvx, 1.0 / delta_s_ncvx], dtype=jnp.float32)

    # Batch tiling: sublane-friendly tile, pad B so it divides evenly.
    tile_b = max(8, (tile_b // 8) * 8)
    B_pad = pl.cdiv(B, tile_b) * tile_b
    if B_pad != B:
        pad = jnp.zeros((B_pad - B, n), jnp.float32)
        x_p = jnp.concatenate([x, pad], axis=0)
        hty_p = jnp.concatenate([ht_x_degraded, pad], axis=0)
    else:
        x_p, hty_p = x, ht_x_degraded
    num_b_tiles = B_pad // tile_b

    # Cost hint: 6*n^2 MACs per batch row (V1 + V2 + fused V3 + mat), 2 EUP ops per elem.
    macs = 6 * B_pad * n * n
    cost = pl.CostEstimate(
        flops=2 * macs,
        transcendentals=2 * B_pad * n,
        bytes_accessed=6 * n * n * 2 + 3 * B_pad * n * 4,
    )

    # VMEM budget: resident weights (+double-buffer headroom) + pipelined I/O tiles.
    weight_bytes = 6 * n * n * 2
    io_bytes = 2 * 3 * tile_b * n * 4
    vmem_limit = int(min(max(4 * (weight_bytes + io_bytes), 8 << 20), 48 << 20))

    grid_spec = pltpu.PrefetchScalarGridSpec(
        num_scalar_prefetch=1,
        grid=(num_b_tiles,),
        in_specs=[
            pl.BlockSpec((tile_b, n), lambda i, s: (i, 0)),   # x  (pipelined)
            pl.BlockSpec((tile_b, n), lambda i, s: (i, 0)),   # Ht*y (pipelined)
            pl.BlockSpec((n, n),      lambda i, s: (0, 0)),   # V1  (resident)
            pl.BlockSpec((n, n),      lambda i, s: (0, 0)),   # V2  (resident)
            pl.BlockSpec((n, 3 * n),  lambda i, s: (0, 0)),   # V3  (resident)
            pl.BlockSpec((n, n),      lambda i, s: (0, 0)),   # mat (resident)
        ],
        out_specs=pl.BlockSpec((tile_b, n), lambda i, s: (i, 0)),
    )

    out = pl.pallas_call(
        _mm_iter_kernel,
        out_shape=jax.ShapeDtypeStruct((B_pad, n), jnp.float32),
        grid_spec=grid_spec,
        compiler_params=pltpu.CompilerParams(
            dimension_semantics=("parallel",),
            vmem_limit_bytes=vmem_limit,
        ),
        cost_estimate=cost,
    )(inv_deltas, x_p, hty_p, w1, w2, w3, wm)

    return out[:B]


def _reference(x, hty, V1, V2, V3, mat_w, d_cvx, d_ncvx):
    first = x @ V1.T - hty
    v2 = x @ V2.T
    cvx = v2 / jnp.sqrt(1.0 + (v2 / d_cvx) ** 2)
    ncvx = v2 / (1.0 + (v2 / d_ncvx) ** 2)
    cat = jnp.concatenate([first, cvx, ncvx], axis=1)
    glob = (cat @ V3.T) @ mat_w.T
    return x - glob


if __name__ == "__main__":
    key = jax.random.PRNGKey(0)
    B, n_in = 32, 32          # n_out must equal n_in for the residual update x - glob
    n_out = n_in

    k = jax.random.split(key, 6)
    x = jax.random.normal(k[0], (B, n_in), dtype=jnp.float32)
    ht_x_deg = jax.random.normal(k[1], (B, n_out), dtype=jnp.float32)
    # Deterministic parameter init (module takes V1/V2/V3 as fixed params; `mat` is a
    # fresh nn.Linear -> any deterministic init is fine for this synthetic kernel).
    V1 = 0.1 * jax.random.normal(k[2], (n_out, n_in), dtype=jnp.float32)
    V2 = 0.1 * jax.random.normal(k[3], (n_out, n_in), dtype=jnp.float32)
    V3 = 0.1 * jax.random.normal(k[4], (n_out, 3 * n_in), dtype=jnp.float32)
    mat_w = 0.1 * jax.random.normal(k[5], (n_out, n_in), dtype=jnp.float32)

    delta_s_cvx = 0.5
    delta_s_ncvx = 1.5

    out = block_forward(x, ht_x_deg, V1, V2, V3, mat_w, delta_s_cvx, delta_s_ncvx)
    out = jax.block_until_ready(out)

    ref = _reference(x, ht_x_deg, V1, V2, V3, mat_w, delta_s_cvx, delta_s_ncvx)
    assert out.shape == (B, n_out)
    # bf16 MXU operands (f32 accumulation) -> tolerance loosened vs. pure-f32 version.
    assert jnp.allclose(out, ref, atol=3e-2, rtol=3e-2)

    print("KERNEL_OK")
</pallas_src>

<mosaic_0001>
module attributes {stable_mosaic.version = 11 : i64} {
  func.func @_mm_iter_kernel(%arg0: i32, %arg1: memref<2xf32, #tpu.memory_space<smem>>, %arg2: memref<8x32xf32, #tpu.memory_space<vmem>>, %arg3: memref<8x32xf32, #tpu.memory_space<vmem>>, %arg4: memref<32x32xbf16, #tpu.memory_space<vmem>>, %arg5: memref<32x32xbf16, #tpu.memory_space<vmem>>, %arg6: memref<32x96xbf16, #tpu.memory_space<vmem>>, %arg7: memref<32x32xbf16, #tpu.memory_space<vmem>>, %arg8: memref<8x32xf32, #tpu.memory_space<vmem>>) attributes {dimension_semantics = [#tpu.dimension_semantics<parallel>], iteration_bounds = array<i64: 4>, scalar_prefetch = 1 : i64, scratch_operands = 0 : i64, tpu.core_type = #tpu.core_type<tc>, window_params = [{transform_indices = @transform_0, window_bounds = array<i64: 8, 32>}, {transform_indices = @transform_1, window_bounds = array<i64: 8, 32>}, {pipeline_mode = #tpu.pipeline_mode<synchronous>, transform_indices = @transform_2, window_bounds = array<i64: 32, 32>}, {pipeline_mode = #tpu.pipeline_mode<synchronous>, transform_indices = @transform_3, window_bounds = array<i64: 32, 32>}, {pipeline_mode = #tpu.pipeline_mode<synchronous>, transform_indices = @transform_4, window_bounds = array<i64: 32, 96>}, {pipeline_mode = #tpu.pipeline_mode<synchronous>, transform_indices = @transform_5, window_bounds = array<i64: 32, 32>}, {transform_indices = @transform_6, window_bounds = array<i64: 8, 32>}]} {
    %c0 = arith.constant 0 : index
    %0 = memref.load %arg1[%c0] : memref<2xf32, #tpu.memory_space<smem>>
    %c1 = arith.constant 1 : index
    %1 = memref.load %arg1[%c1] : memref<2xf32, #tpu.memory_space<smem>>
    %c0_0 = arith.constant 0 : index
    %c0_1 = arith.constant 0 : index
    %2 = vector.load %arg2[%c0_0, %c0_1] : memref<8x32xf32, #tpu.memory_space<vmem>>, vector<8x32xf32>
    %3 = arith.truncf %2 : vector<8x32xf32> to vector<8x32xbf16>
    %c0_2 = arith.constant 0 : index
    %c0_3 = arith.constant 0 : index
    %4 = vector.load %arg4[%c0_2, %c0_3] : memref<32x32xbf16, #tpu.memory_space<vmem>>, vector<32x32xbf16>
    %cst = arith.constant dense<0.000000e+00> : vector<8x32xf32>
    %5 = tpu.matmul %3, %4, %cst {dimension_numbers = #tpu.dot_dimension_numbers<[1], [1], [0], [0], [0, 0, 1, 0], [], []>} : vector<8x32xbf16>, vector<32x32xbf16>, vector<8x32xf32> -> vector<8x32xf32>
    %c0_4 = arith.constant 0 : index
    %c0_5 = arith.constant 0 : index
    %6 = vector.load %arg3[%c0_4, %c0_5] : memref<8x32xf32, #tpu.memory_space<vmem>>, vector<8x32xf32>
    %7 = arith.subf %5, %6 : vector<8x32xf32>
    %c0_6 = arith.constant 0 : index
    %c0_7 = arith.constant 0 : index
    %8 = vector.load %arg5[%c0_6, %c0_7] : memref<32x32xbf16, #tpu.memory_space<vmem>>, vector<32x32xbf16>
    %cst_8 = arith.constant dense<0.000000e+00> : vector<8x32xf32>
    %9 = tpu.matmul %3, %8, %cst_8 {dimension_numbers = #tpu.dot_dimension_numbers<[1], [1], [0], [0], [0, 0, 1, 0], [], []>} : vector<8x32xbf16>, vector<32x32xbf16>, vector<8x32xf32> -> vector<8x32xf32>
    %10 = vector.broadcast %0 : f32 to vector<8x32xf32>
    %11 = arith.mulf %9, %10 : vector<8x32xf32>
    %12 = arith.mulf %11, %11 : vector<8x32xf32>
    %cst_9 = arith.constant 1.000000e+00 : f32
    %13 = vector.broadcast %cst_9 : f32 to vector<8x32xf32>
    %14 = arith.addf %13, %12 : vector<8x32xf32>
    %15 = math.rsqrt %14 : vector<8x32xf32>
    %16 = arith.mulf %9, %15 : vector<8x32xf32>
    %17 = vector.broadcast %1 : f32 to vector<8x32xf32>
    %18 = arith.mulf %9, %17 : vector<8x32xf32>
    %19 = arith.mulf %18, %18 : vector<8x32xf32>
    %cst_10 = arith.constant 1.000000e+00 : f32
    %20 = vector.broadcast %cst_10 : f32 to vector<8x32xf32>
    %21 = arith.addf %20, %19 : vector<8x32xf32>
    %22 = tpu.reciprocal %21 {approx = true} : vector<8x32xf32> -> vector<8x32xf32>
    %23 = arith.mulf %9, %22 : vector<8x32xf32>
    %24 = tpu.concatenate %7, %16, %23 in 1 : vector<8x32xf32>, vector<8x32xf32>, vector<8x32xf32> -> vector<8x96xf32>
    %25 = arith.truncf %24 : vector<8x96xf32> to vector<8x96xbf16>
    %c0_11 = arith.constant 0 : index
    %c0_12 = arith.constant 0 : index
    %26 = vector.load %arg6[%c0_11, %c0_12] : memref<32x96xbf16, #tpu.memory_space<vmem>>, vector<32x96xbf16>
    %cst_13 = arith.constant dense<0.000000e+00> : vector<8x32xf32>
    %27 = tpu.matmul %25, %26, %cst_13 {dimension_numbers = #tpu.dot_dimension_numbers<[1], [1], [0], [0], [0, 0, 1, 0], [], []>} : vector<8x96xbf16>, vector<32x96xbf16>, vector<8x32xf32> -> vector<8x32xf32>
    %28 = arith.truncf %27 : vector<8x32xf32> to vector<8x32xbf16>
    %c0_14 = arith.constant 0 : index
    %c0_15 = arith.constant 0 : index
    %29 = vector.load %arg7[%c0_14, %c0_15] : memref<32x32xbf16, #tpu.memory_space<vmem>>, vector<32x32xbf16>
    %cst_16 = arith.constant dense<0.000000e+00> : vector<8x32xf32>
    %30 = tpu.matmul %28, %29, %cst_16 {dimension_numbers = #tpu.dot_dimension_numbers<[1], [1], [0], [0], [0, 0, 1, 0], [], []>} : vector<8x32xbf16>, vector<32x32xbf16>, vector<8x32xf32> -> vector<8x32xf32>
    %31 = arith.subf %2, %30 : vector<8x32xf32>
    %c0_17 = arith.constant 0 : index
    %c0_18 = arith.constant 0 : index
    %32 = vector.load %arg8[%c0_17, %c0_18] : memref<8x32xf32, #tpu.memory_space<vmem>>, vector<8x32xf32>
    tpu.vector_store %arg8[%c0_17, %c0_18], %31 {strides = array<i32>} : memref<8x32xf32, #tpu.memory_space<vmem>>, vector<8x32xf32>,
    return
  }
  func.func @transform_0(%arg0: i32, %arg1: memref<2xf32, #tpu.memory_space<smem>>) -> (i32, i32) {
    %c0_i32 = arith.constant 0 : i32
    %c0_i32_0 = arith.constant 0 : i32
    return %arg0, %c0_i32 : i32, i32
  }
  func.func @transform_1(%arg0: i32, %arg1: memref<2xf32, #tpu.memory_space<smem>>) -> (i32, i32) {
    %c0_i32 = arith.constant 0 : i32
    %c0_i32_0 = arith.constant 0 : i32
    return %arg0, %c0_i32 : i32, i32
  }
  func.func @transform_2(%arg0: i32, %arg1: memref<2xf32, #tpu.memory_space<smem>>) -> (i32, i32) {
    %c0_i32 = arith.constant 0 : i32
    %c0_i32_0 = arith.constant 0 : i32
    %c0_i32_1 = arith.constant 0 : i32
    return %c0_i32, %c0_i32_0 : i32, i32
  }
  func.func @transform_3(%arg0: i32, %arg1: memref<2xf32, #tpu.memory_space<smem>>) -> (i32, i32) {
    %c0_i32 = arith.constant 0 : i32
    %c0_i32_0 = arith.constant 0 : i32
    %c0_i32_1 = arith.constant 0 : i32
    return %c0_i32, %c0_i32_0 : i32, i32
  }
  func.func @transform_4(%arg0: i32, %arg1: memref<2xf32, #tpu.memory_space<smem>>) -> (i32, i32) {
    %c0_i32 = arith.constant 0 : i32
    %c0_i32_0 = arith.constant 0 : i32
    %c0_i32_1 = arith.constant 0 : i32
    return %c0_i32, %c0_i32_0 : i32, i32
  }
  func.func @transform_5(%arg0: i32, %arg1: memref<2xf32, #tpu.memory_space<smem>>) -> (i32, i32) {
    %c0_i32 = arith.constant 0 : i32
    %c0_i32_0 = arith.constant 0 : i32
    %c0_i32_1 = arith.constant 0 : i32
    return %c0_i32, %c0_i32_0 : i32, i32
  }
  func.func @transform_6(%arg0: i32, %arg1: memref<2xf32, #tpu.memory_space<smem>>) -> (i32, i32) {
    %c0_i32 = arith.constant 0 : i32
    %c0_i32_0 = arith.constant 0 : i32
    return %arg0, %c0_i32 : i32, i32
  }
}

</mosaic_0001>

<bundles_post_ra>
// kernel: tpu_custom_call.1
= control target key start
LH: loop header
LB: loop body
LE: loop exit
PB: predicated region body
PF: predicated region fallthrough
CT: control target
= control target key end

     0   :  { %s1585_s0 = inlined_call_operand.hbm [shape: f32[2], index: 0, kind: input, shape index: {}]   ;;  %s1586_s1 = inlined_call_operand.hbm [shape: f32[32,32], index: 1, kind: input, shape index: {}]   ;;  %s1587_s2 = inlined_call_operand.hbm [shape: f32[32,32], index: 2, kind: input, shape index: {}]   ;;  %s1588_s3 = inlined_call_operand.hbm [shape: bf16[32,32], index: 3, kind: input, shape index: {}]   ;;  %s1589_s4 = inlined_call_operand.hbm [shape: bf16[32,32], index: 4, kind: input, shape index: {}]   ;;  %s1590_s5 = inlined_call_operand.vmem [shape: bf16[32,96], index: 5, kind: input, shape index: {}]   ;;  %s1591_s6 = inlined_call_operand.hbm [shape: bf16[32,32], index: 6, kind: input, shape index: {}]   ;;  %s1592_s7 = inlined_call_operand.hbm [shape: f32[32,32], index: 7, kind: output, shape index: {}]  }
   0x1   :  { %1597 = sst [smem:[#allocation20_spill]] %s1588_s3  ;;  %s951_s26 = scalar_lea.hbm %s1585_s0, 16 }
   0x2   :  { %1598 = sst [smem:[#allocation21_spill]] %s1589_s4  ;;  %p952_p0 = scmp.ne.s32.totalorder %s1585_s0, %s951_s26 }
   0x3   :  { %1599 = sst [smem:[#allocation22_spill]] %s1591_s6  ;;  %p955_p1 = scmp.lt.u32.totalorder %s951_s26, %s1585_s0 }
   0x5   :  { %p957_p2 = pnand %p955_p1, %p952_p0 }
   0x7   :  { %960 = shalt.err (!%p957_p2)  }
   0x8   :  { %s1187_s8 = smov [#allocation3]  }
   0x9   :  { %13 = dma.hbm_to_smem %s1585_s0, 16, %s1187_s8, [#allocation2] }
   0xa   :  { %1149 = dma.done.wait [#allocation2], 16 }
   0xb   :  { %1150 = vsyncadd [#allocation2], 4294967280 }
   0xc   :  { %15 = sfence }
   0xd   :  { %16 = vsyncpa [#allocation5], 0 }
   0xe   :  { %18 = vsyncpa [#allocation5 + $0x1], 0 }
   0xf   :  { %19 = vsyncpa [#allocation8], 0 }
  0x10   :  { %21 = vsyncpa [#allocation8 + $0x1], 0 }
  0x11   :  { %22 = vsyncpa [#allocation11], 0 }
  0x12   :  { %23 = vsyncpa [#allocation6], 0 }
  0x13   :  { %25 = vsyncpa [#allocation6 + $0x1], 0  ;;  %s1252_s11 = smov 0   ;;  %s1254_s12 = smov 0  }
  0x14   :  { %s1256_s13 = smov 0   ;;  %s1258_s14 = smov 0  }
  0x15 LB: > { %s1273_s0 = sadd.s32 4294967295, %s1185_s14   ;;  %s772_s15 = sadd.s32 4294967294, %s1185_s14   ;;  %s1185_s14 = sphi %s1258_s14, %s1622_s14   ;;  %s1181_s13 = sphi %s1256_s13, %s1621_s13   ;;  %s1177_s12 = sphi %s1254_s12, %s1620_s12   ;;  %s1173_s11 = sphi %s1252_s11, %s1619_s11  }
  0x16   : > { %p51_p3 = scmp.ne.s32.totalorder %s1177_s12, %s1173_s11  ;;  %p1593_p4 = scmp.eq.s32.totalorder %s1273_s0, 0 }
  0x17   : > { %p191_p6 = scmp.eq.s32.totalorder %s772_s15, 3  ;;  %p773_p8 = scmp.ge.s32.totalorder %s1185_s14, 1 }
  0x18   : > { %p1282_p7 = por %p1593_p4, %p51_p3  ;;  %p198_p10 = scmp.lt.s32.totalorder %s1185_s14, 5 }
  0x19   : > { %p1287_p9 = por %p191_p6, %p51_p3  ;;  %s1188_s19 = smov [#allocation9]  }
  0x1a   : > { %s1600_s16 = scalar_select %p1282_p7, 1, 0 }
  0x1b   : > { %s1601_s17 = scalar_select %p1287_p9, 1, 0 }
  0x1c   : > { %p1292_p11 = pnand %p773_p8, %p198_p10  ;;  %s210_s20 = sshll.u32 %s1188_s19, 4  ;;  %s1296_s20 = int_to_ptr.vmem [resolvable:$true] %s210_s20 }
  0x1d   : > { %s1189_s22 = smov [#allocation10]   ;;  %s1190_s24 = smov [#allocation12]  }
  0x1e   : > { %s1602_s18 = scalar_select %p1292_p11, 1, 0 }
  0x1f   : > { %p868_p12 = pneg %p1292_p11  ;;  %s223_s23 = sshll.u32 %s1189_s22, 4  ;;  %s1306_s23 = int_to_ptr.vmem [resolvable:$true] %s223_s23 }
  0x20   : > { %s1308_s25 = sshll.u32 %s1190_s24, 4  ;;  %s1604_s3 = sld [smem:[#allocation20_spill]]  ;;  %s240_s25 = int_to_ptr.vmem [resolvable:$true] %s1308_s25 }
  0x21   : > { %p1302_p13 = pnand %p868_p12, %p1593_p4 }
  0x23   : > { %p1318_p1 = pneg %p1302_p13 }
  0x26   : > { %s961_s28 = scalar_lea.hbm %s1604_s3, 256 }
  0x27   : > { %p962_p0 = scmp.ne.s32.totalorder %s1604_s3, %s961_s28  ;;  %p968_p6 = scmp.lt.u32.totalorder %s961_s28, %s1604_s3 }
  0x29   : > { %p964_p2 = pnand %p1318_p1, %p962_p0 }
  0x2b   : > { %p965_p3 = pneg %p964_p2 }
  0x2d   : > { %p970_p8 = pnand %p968_p6, %p965_p3 }
  0x2f   : > { %973 = shalt.err (!%p970_p8)
}
  0x30   : > { %s974_s15 = scalar_lea.vmem %s1296_s20, 256  ;;  %p982_p5 = scmp.lt.s32.totalorder %s1296_s20, %s1296_s20 }
  0x31   : > { %p975_p10 = scmp.ne.s32.totalorder %s1296_s20, %s974_s15  ;;  %p983_p9 = scmp.lt.s32.totalorder %s974_s15, %s974_s15 }
  0x33   : > { %p977_p12 = pnand %p975_p10, %p1318_p1  ;;  %p984_p0 = por %p983_p9, %p982_p5 }
  0x35   : > { %p978_p4 = pneg %p977_p12 }
  0x37   : > { %p985_p2 = pnand %p984_p0, %p978_p4 }
  0x39   : > { %988 = shalt.err (!%p985_p2)
}
  0x3a   : > { %s1191_s19 = smov 64   ;;  %s1192_s22 = smov 4  }
  0x3b   : > { %871 = dma.hbm_to_vmem [thread:$0]  (!%p1302_p13), %s1604_s3, 256, %s1296_s20, [#allocation8], %s1191_s19, %s1191_s19, %s1192_s22  }
  0x3c   : > { %s1606_s4 = sld [smem:[#allocation21_spill]] }
  0x42   : > { %s989_s29 = scalar_lea.hbm %s1606_s4, 256 }
  0x43   : > { %p990_p4 = scmp.ne.s32.totalorder %s1606_s4, %s989_s29  ;;  %p996_p3 = scmp.lt.u32.totalorder %s989_s29, %s1606_s4 }
  0x45   : > { %p992_p5 = pnand %p990_p4, %p1318_p1 }
  0x47   : > { %p993_p9 = pneg %p992_p5 }
  0x49   : > { %p998_p6 = pnand %p996_p3, %p993_p9 }
  0x4b   : > { %1001 = shalt.err (!%p998_p6)
}
  0x4c   : > { %s1002_s20 = scalar_lea.vmem %s1306_s23, 256  ;;  %p1010_p0 = scmp.lt.s32.totalorder %s1306_s23, %s1306_s23 }
  0x4d   : > { %p1003_p8 = scmp.ne.s32.totalorder %s1306_s23, %s1002_s20  ;;  %p1011_p2 = scmp.lt.s32.totalorder %s1002_s20, %s1002_s20 }
  0x4f   : > { %p1005_p10 = pnand %p1003_p8, %p1318_p1  ;;  %p1012_p4 = por %p1011_p2, %p1010_p0 }
  0x51   : > { %p1006_p12 = pneg %p1005_p10 }
  0x53   : > { %p1013_p5 = pnand %p1012_p4, %p1006_p12 }
  0x55   : > { %1016 = shalt.err (!%p1013_p5)
}
  0x56   : > { %874 = dma.hbm_to_vmem [thread:$0]  (!%p1302_p13), %s1606_s4, 256, %s1306_s23, [#allocation11], %s1191_s19, %s1191_s19, %s1192_s22  }
  0x57   : > { %s1607_s6 = sld [smem:[#allocation22_spill]] }
  0x5d   : > { %s1017_s29 = scalar_lea.hbm %s1607_s6, 256 }
  0x5e   : > { %p1018_p9 = scmp.ne.s32.totalorder %s1607_s6, %s1017_s29  ;;  %p1024_p8 = scmp.lt.u32.totalorder %s1017_s29, %s1607_s6 }
  0x60   : > { %p1020_p3 = pnand %p1018_p9, %p1318_p1 }
  0x62   : > { %p1021_p6 = pneg %p1020_p3 }
  0x64   : > { %p1026_p10 = pnand %p1024_p8, %p1021_p6 }
  0x66   : > { %1029 = shalt.err (!%p1026_p10)
}
  0x67   : > { %s1030_s20 = scalar_lea.vmem %s240_s25, 256  ;;  %p1038_p4 = scmp.lt.s32.totalorder %s240_s25, %s240_s25 }
  0x68   : > { %p1031_p12 = scmp.ne.s32.totalorder %s240_s25, %s1030_s20  ;;  %p1039_p5 = scmp.lt.s32.totalorder %s1030_s20, %s1030_s20 }
  0x6a   : > { %p1033_p0 = pnand %p1031_p12, %p1318_p1  ;;  %p1040_p7 = por %p1039_p5, %p1038_p4 }
  0x6c   : > { %p1034_p2 = pneg %p1033_p0 }
  0x6e   : > { %p1041_p11 = pnand %p1040_p7, %p1034_p2 }
  0x70   : > { %1044 = shalt.err (!%p1041_p11)
}
  0x71   : > { %877 = dma.hbm_to_vmem [thread:$0]  (!%p1302_p13), %s1607_s6, 256, %s240_s25, [#allocation11], %s1191_s19, %s1191_s19, %s1192_s22  }
  0x72   : > { %s1391_s8 = sadd.s32 1, %s1185_s14   ;;  %s38_s26 = sadd.s32 1, %s1181_s13 }
  0x73   : > { %s35_s21 = ssub.s32 %s1185_s14, %s1391_s8  ;;  %p45_p11 = scmp.ne.s32.totalorder %s1181_s13, %s1177_s12 }
  0x74   : > { %p36_p7 = scmp.eq.s32.totalorder %s35_s21, 0  ;;  %p46_p1 = scmp.eq.s32.totalorder %s1185_s14, 0 }
  0x75   : > { %p892_p9 = scmp.lt.s32.totalorder %s1185_s14, 4  ;;  %p1608_p6 = scmp.eq.s32.totalorder %s1273_s0, 3 }
  0x76   : > { %s1401_s27 = scalar_select %p36_p7, %s1181_s13, %s38_s26  }
  0x77   : > { %p47_p3 = por %p46_p1, %p45_p11  ;;  %p1405_p8 = por %p1608_p6, %p45_p11 }
  0x78   : > { %s253_s29 = sand.u32 1, %s1181_s13   ;;  %s779_s30 = sshll.u32 %s1185_s14, 7 }
  0x79   : > { %s1609_s28 = scalar_select %p1405_p8, 1, 0 }
  0x7a   : > { %s1411_s25 = sshll.u32 %s253_s29, 3  ;;  %s1416_s9 = scalar_lea.hbm %s1586_s1, %s779_s30 }
  0x7b   : > { %s257_s10 = scalar_lea.vmem [#allocation4], %s1411_s25  ;;  %p1419_p13 = pnand %p892_p9, %p47_p3 }
  0x7c   : > { %s264_s15 = sshll.u32 %s257_s10, 4  ;;  %s1428_s21 = scalar_lea.hbm %s1587_s2, %s779_s30  ;;  %s1423_s15 = int_to_ptr.vmem [resolvable:$true] %s264_s15 }
  0x7d   : > { %s254_s26 = scalar_lea.sflag [#allocation5], %s253_s29  ;;  %s1045_s19 = scalar_lea.hbm %s1416_s9, 128 }
  0x7e   : > { %p1046_p10 = scmp.ne.s32.totalorder %s1416_s9, %s1045_s19  ;;  %p1047_p12 = pneg %p1419_p13 }
  0x7f   : > { %s1050_s3 = scalar_lea.hbm %s1586_s1, 512  ;;  %p1051_p4 = scmp.lt.u32.totalorder %s1416_s9, %s1586_s1 }
  0x80   : > { %p1048_p0 = pnand %p1047_p12, %p1046_p10  ;;  %p1052_p5 = scmp.lt.u32.totalorder %s1050_s3, %s1045_s19 }
  0x81   : > { %p1054_p11 = scmp.lt.u32.totalorder %s1045_s19, %s1416_s9 }
  0x82   : > { %p1049_p2 = pneg %p1048_p0  ;;  %p1053_p7 = por %p1052_p5, %p1051_p4 }
  0x84   : > { %p1055_p1 = por %p1054_p11, %p1053_p7 }
  0x86   : > { %p1056_p9 = pnand %p1055_p1, %p1049_p2 }
  0x88   : > { %1059 = shalt.err (!%p1056_p9)
}
  0x89   : > { %s1060_s29 = scalar_lea.vmem %s1423_s15, 128  ;;  %s1193_s30 = smov [#allocation4]  }
  0x8a   : > { %p1061_p3 = scmp.ne.s32.totalorder %s1423_s15, %s1060_s29  ;;  %s1065_s23 = sshll.u32 %s1193_s30, 4  ;;  %s1066_s23 = int_to_ptr.vmem [resolvable:$false] %s1065_s23 }
  0x8b   : > { %s1067_s4 = scalar_lea.vmem %s1066_s23, 256  ;;  %p1068_p0 = scmp.lt.s32.totalorder %s1423_s15, %s1066_s23 }
  0x8c   : > { %p1063_p6 = pnand %p1061_p3, %p1047_p12  ;;  %p1069_p4 = scmp.lt.s32.totalorder %s1067_s4, %s1060_s29 }
  0x8e   : > { %p1064_p10 = pneg %p1063_p6  ;;  %p1070_p5 = por %p1069_p4, %p1068_p0 }
  0x90   : > { %p1071_p7 = pnand %p1070_p5, %p1064_p10 }
  0x92   : > { %1074 = shalt.err (!%p1071_p7)
}
  0x93   : > { %881 = dma.hbm_to_vmem [thread:$0]  (!%p1419_p13), %s1416_s9, 128, %s1423_s15, %s254_s26  }
  0x94   : > { %s271_s3 = sand.u32 1, %s1185_s14   ;;  %s275_s6 = scalar_lea.vmem [#allocation7], %s1411_s25 }
  0x95   : > { %s282_s24 = sshll.u32 %s275_s6, 4  ;;  %s272_s19 = scalar_lea.sflag [#allocation8], %s271_s3  ;;  %s283_s24 = int_to_ptr.vmem [resolvable:$true] %s282_s24 }
  0x96   : > { %s1075_s22 = scalar_lea.hbm %s1428_s21, 128  ;;  %s1080_s30 = scalar_lea.hbm %s1587_s2, 512 }
  0x97   : > { %p1076_p2 = scmp.ne.s32.totalorder %s1428_s21, %s1075_s22  ;;  %p1081_p9 = scmp.lt.u32.totalorder %s1428_s21, %s1587_s2 }
  0x98   : > { %p1082_p3 = scmp.lt.u32.totalorder %s1080_s30, %s1075_s22  ;;  %p1084_p10 = scmp.lt.u32.totalorder %s1075_s22, %s1428_s21 }
  0x99   : > { %p1078_p11 = pnand %p1076_p2, %p1047_p12 }
  0x9a   : > { %p1083_p6 = por %p1082_p3, %p1081_p9 }
  0x9b   : > { %p1079_p1 = pneg %p1078_p11 }
  0x9c   : > { %p1085_p0 = por %p1084_p10, %p1083_p6 }
  0x9e   : > { %p1086_p4 = pnand %p1085_p0, %p1079_p1 }
  0xa0   : > { %1089 = shalt.err (!%p1086_p4)
}
  0xa1   : > { %s1090_s25 = scalar_lea.vmem %s283_s24, 128  ;;  %s1194_s9 = smov [#allocation7]  }
  0xa2   : > { %p1091_p5 = scmp.ne.s32.totalorder %s283_s24, %s1090_s25  ;;  %s1095_s15 = sshll.u32 %s1194_s9, 4  ;;  %s1096_s15 = int_to_ptr.vmem [resolvable:$false] %s1095_s15 }
  0xa3   : > { %s1097_s26 = scalar_lea.vmem %s1096_s15, 256  ;;  %p1098_p11 = scmp.lt.s32.totalorder %s283_s24, %s1096_s15 }
  0xa4   : > { %p1093_p7 = pnand %p1091_p5, %p1047_p12  ;;  %p1099_p8 = scmp.lt.s32.totalorder %s1097_s26, %s1090_s25 }
  0xa6   : > { %p1094_p2 = pneg %p1093_p7  ;;  %p1100_p3 = por %p1099_p8, %p1098_p11 }
  0xa8   : > { %p1101_p9 = pnand %p1100_p3, %p1094_p2 }
  0xaa   : > { %1104 = shalt.err (!%p1101_p9)
}
  0xab   : > { %884 = dma.hbm_to_vmem [thread:$0]  (!%p1419_p13), %s1428_s21, 128, %s283_s24, %s272_s19  }
  0xac   : > { %p1611_p1 = scmp.ne.s32.totalorder %s1602_s18, 0 }
  0xad   : > { %s1479_s3 = sand.u32 (!%p1611_p1), 1, %s1177_s12   ;;  %p1612_p8 = scmp.ne.s32.totalorder (!%p1611_p1), %s1600_s16, 0 }
  0xae   : > { %291 = sbr.rel (%p1611_p1) target bundleno = 1005 (0x3ed), region = 44  ;;  %s1482_s6 = sshll.u32 (!%p1611_p1), %s1479_s3, 3 }
  0xaf   : > { %s294_s22 = scalar_lea.sflag (!%p1611_p1), [#allocation5], %s1479_s3  ;;  %s297_s10 = scalar_lea.vmem (!%p1611_p1), [#allocation4], %s1482_s6 }
  0xb5   : > { %1152 = dma.done.wait (%p1612_p8), %s294_s22, 128  }
  0xb6   : > { %1154 = vsyncadd (%p1612_p8), %s294_s22, 4294967168  ;;  %s302_s18 = sand.u32 1, %s1273_s0   ;;  %s306_s21 = scalar_lea.vmem [#allocation7], %s1482_s6 }
  0xb7   : > { %s303_s20 = scalar_lea.sflag [#allocation8], %s302_s18 }
  0xb8   : > { %1156 = dma.done.wait (%p1612_p8), %s303_s20, 128  }
  0xb9   : > { %1158 = vsyncadd (%p1612_p8), %s303_s20, 4294967168  ;;  %p1613_p13 = scmp.eq.s32.totalorder %s1273_s0, 0 }
  0xbb   : > { %1160 = dma.done.wait (%p1613_p13), [#allocation8], 256   ;;  %p1614_p12 = pmov %p1613_p13 }
  0xbd   : > { %1162 = vsyncadd (%p1614_p12), [#allocation8], 4294967040  ;;  %p1615_p6 = pmov %p1614_p12 }
  0xbf   : > { %1164 = dma.done.wait (%p1615_p6), [#allocation11], 512   ;;  %p1616_p10 = pmov %p1615_p6 }
  0xc0   : > { %v1195_v0 = vmov 0.0   ;;  %vm1196_vm0 = vmmov 0   ;;  %vm371_vm1 = vcmask 261120   ;;  %v939_v1 = vld [vmem:[#allocation10] sm:$0xff]   ;;  %v941_v3 = vld [vmem:[#allocation9] sm:$0xff]   ;;  %v940_v4 = vld [vmem:[#allocation10 + $0x8] sm:$0xff]  }
  0xc1   : > { %1166 = vsyncadd (%p1616_p10), [#allocation11], 4294966784  ;;  %826 = vmatprep.subr.bf16.mxu1 %v1195_v0  ;;  %830 = vmatprep.mubr.msk.bf16.mxu1 %vm1196_vm0, %v1195_v0  ;;  %v438_v2 = vsel %vm371_vm1, %v939_v1, 0  ;;  %v376_v5 = vsel %vm371_vm1, %v941_v3, 0  ;;  %v942_v6 = vld [vmem:[#allocation9 + $0x8] sm:$0xff]   ;;  %v441_v7 = vsel %vm371_vm1, %v940_v4, 0 }
  0xc2   : > { %818 = vmatprep.subr.bf16.mxu0 %v1195_v0  ;;  %822 = vmatprep.mubr.msk.bf16.mxu0 %vm1196_vm0, %v1195_v0  ;;  %v1511_v8 = vld [vmem:[%s297_s10] sm:$0xff]  ;;  %v379_v9 = vsel %vm371_vm1, %v942_v6, 0  ;;  %v943_v11 = vld [vmem:[%s1590_s5] sm:$0xff]   ;;  %vm521_vm2 = vcmask 785408   ;;  %s353_s19 = sld [smem:[#allocation3]]  ;;  %s789_s29 = sld [smem:[#allocation3 + $0x1]] }
  0xc3   : > { %827 = vmatpush3.bf16.xpose.msra.mxu1 %v438_v2  ;;  %819 = vmatpush3.bf16.xpose.msra.mxu0 %v376_v5  ;;  %v356_v10 = vpack.c.bf16 %v1511_v8, %v1511_v8  ;;  %v526_v12 = vsel %vm521_vm2, %v943_v11, 0  ;;  %v944_v28 = vld [vmem:[%s1590_s5 + $0x8] sm:$0xff]   ;;  %v945_v31 = vld [vmem:[#allocation12] sm:$0xff]   ;;  %v946_v35 = vld [vmem:[#allocation12 + $0x8] sm:$0xff]   ;;  %s1197_s4 = smov 32   ;;  %s1198_s25 = smov 64  }
  0xc4   : > { %828 = vmatprep.subr.bf16.mxu1 %v1195_v0  ;;  %820 = vmatprep.subr.bf16.mxu0 %v1195_v0  ;;  %v529_v30 = vsel %vm521_vm2, %v944_v28, 0  ;;  %v590_v32 = vsel %vm371_vm1, %v945_v31, 0  ;;  %v593_v38 = vsel %vm371_vm1, %v946_v35, 0  ;;  %v421_v39 = vld [vmem:[%s306_s21] sm:$0xff]  ;;  %vm504_vm3 = vcmask 523264   ;;  %s803_s9 = sshll.u32 %s1273_s0, 7 }
  0xc5   : > { %s351_s15 = scalar_lea.vmem [#allocation13], %s1482_s6  ;;  %s1541_s18 = scalar_lea.hbm %s1592_s7, %s803_s9 }
  0xc6   : > { %s651_s26 = sshll.u32 %s351_s15, 4  ;;  %s638_s0 = scalar_lea.sflag [#allocation6], %s1479_s3  ;;  %s1543_s26 = int_to_ptr.vmem [resolvable:$true] %s651_s26 }
  0xc7   : > { %s1105_s6 = scalar_lea.vmem %s1543_s26, 128  ;;  %p1617_p4 = scmp.ne.s32.totalorder %s1609_s28, 0 }
  0xc8   : > { %v483_v13 = vstv %s353_s19  ;;  %v489_v14 = vstv %s789_s29  ;;  %p1106_p0 = scmp.ne.s32.totalorder %s1543_s26, %s1105_s6  ;;  %s1199_s20 = smov [#allocation13]  }
  0xc9   : > { %s1109_s21 = sshll.u32 %s1199_s20, 4  ;;  %s1110_s21 = int_to_ptr.vmem [resolvable:$false] %s1109_s21 }
  0xca   : > { %p1107_p5 = pnand %p1106_p0, %p1617_p4  ;;  %s1111_s16 = scalar_lea.vmem %s1110_s21, 256 }
  0xcb   : > { %829 = vmatpush3.bf16.xpose.msra.mxu1 %v441_v7  ;;  %821 = vmatpush3.bf16.xpose.msra.mxu0 %v379_v9  ;;  %p1112_p2 = scmp.lt.s32.totalorder %s1543_s26, %s1110_s21  ;;  %p1113_p11 = scmp.lt.s32.totalorder %s1111_s16, %s1105_s6 }
  0xcc   : > { %842 = vmatprep.subr.bf16.mxu1 %v1195_v0  ;;  %834 = vmatprep.subr.bf16.mxu0 %v1195_v0  ;;  %p1108_p7 = pneg %p1107_p5 }
  0xcd   : > { %p1114_p3 = por %p1113_p11, %p1112_p2 }
  0xcf   : > { %p1115_p9 = pnand %p1114_p3, %p1108_p7 }
  0xd2   : > { %831 = vmatmul.mubr.msk.bf16.vlgmr.msra.gmra.mrb[0].mxu1 %vm371_vm1, %v356_v10  ;;  %823 = vmatmul.mubr.msk.bf16.vlgmr.msra.gmra.mrb[0].mxu0 %vm371_vm1, %v356_v10 }
  0xd3   : > { %846 = vmatprep.mubr.msk.bf16.mxu1 %vm1196_vm0, %v1195_v0  ;;  %838 = vmatprep.mubr.msk.bf16.mxu0 %vm1196_vm0, %v1195_v0 }
  0xd4   : > { %835 = vmatpush3.bf16.xpose.msra.mxu0 %v526_v12  ;;  %843 = vmatpush3.bf16.xpose.msra.mxu1 %v590_v32 }
  0xd5   : > { %836 = vmatprep.subr.bf16.mxu0 %v1195_v0  ;;  %844 = vmatprep.subr.bf16.mxu1 %v1195_v0 }
  0xdc   : > { %837 = vmatpush3.bf16.xpose.msra.mxu0 %v529_v30  ;;  %845 = vmatpush3.bf16.xpose.msra.mxu1 %v593_v38 }
 0x1a5   : > { %v477_v15 = vpop.f32.mrb[0].mxu1  ;;  %v415_v23 = vpop.f32.mrb[0].mxu0 }
 0x1a6   : > { %v484_v16 = vmul.f32 %v483_v13, %v477_v15  ;;  %v490_v17 = vmul.f32 %v489_v14, %v477_v15  ;;  %v832_v18 = vpop.f32.mrb[1].mxu1  ;;  %v824_v24 = vpop.f32.mrb[1].mxu0  ;;  %v422_v40 = vsub.f32 %v415_v23, %v421_v39 }
 0x1a7   : > { %v480_v19 = vpop.f32.mrb[2].mxu1  ;;  %v418_v27 = vpop.f32.mrb[2].mxu0 }
 0x1a8   : > { %v485_v20 = vmul.f32 %v484_v16, %v484_v16  ;;  %v491_v21 = vmul.f32 %v490_v17, %v490_v17  ;;  %v833_v22 = vpop.f32.mrb[3].mxu1  ;;  %v825_v29 = vpop.f32.mrb[3].mxu0 }
 0x1aa   : > { %v486_v25 = vadd.f32 1.0, %v485_v20  ;;  %v492_v26 = vadd.f32 1.0, %v491_v21 }
 0x1ac   : > { %947 = vrsqrt.f32 %v486_v25 }
 0x1ad   : > { %949 = vrcp.f32 %v492_v26 }
 0x1b6   : > { %v948_v33 = vpop.eup %947 }
 0x1b7   : > { %v488_v34 = vmul.f32 %v948_v33, %v477_v15  ;;  %v950_v36 = vpop.eup %949 }
 0x1b8   : > { %v494_v37 = vmul.f32 %v950_v36, %v477_v15 }
 0x1b9   : > { %496 = vrot.lane.b32.xlu0 %v488_v34, %s1197_s4 }
 0x1bd   : > { %500 = vrot.lane.b32.xlu0 %v494_v37, %s1198_s25 }
 0x22b   : > { %v497_v41 = vpop.permute.xlu0 %496 }
 0x22c   : > { %v503_v42 = vsel %vm371_vm1, %v422_v40, %v497_v41 }
 0x22f   : > { %v501_v43 = vpop.permute.xlu0 %500 }
 0x230   : > { %v505_v44 = vsel %vm504_vm3, %v503_v42, %v501_v43 }
 0x231   : > { %v506_v45 = vpack.c.bf16 %v505_v44, %v505_v44 }
 0x233   : > { %839 = vmatmul.mubr.msk.bf16.vlgmr.msra.gmra.mrb[4].mxu0 %vm521_vm2, %v506_v45 }
 0x306   : > { %v565_v46 = vpop.f32.mrb[4].mxu0 }
 0x307   : > { %v571_v47 = vpack.c.bf16 %v565_v46, %v565_v46  ;;  %v840_v48 = vpop.f32.mrb[5].mxu0 }
 0x308   : > { %v568_v49 = vpop.f32.mrb[6].mxu0 }
 0x309   : > { %v841_v50 = vpop.f32.mrb[7].mxu0  ;;  %847 = vmatmul.mubr.msk.bf16.vlgmr.msra.gmra.mrb[4].mxu1 %vm371_vm1, %v571_v47 }
 0x3dc   : > { %v629_v51 = vpop.f32.mrb[4].mxu1 }
 0x3dd   : > { %v635_v52 = vsub.f32 %v1511_v8, %v629_v51  ;;  %v848_v53 = vpop.f32.mrb[5].mxu1 }
 0x3de   : > { %v632_v54 = vpop.f32.mrb[6].mxu1 }
 0x3df   : > { %v849_v55 = vpop.f32.mrb[7].mxu1  ;;  %636 = vst.msk [vmem:[%s351_s15] sm:$0xff] %vm371_vm1, %v635_v52 }
 0x3e0   : > { %1118 = shalt.err (!%p1115_p9)
}
 0x3e1   : > { %s1119_s3 = scalar_lea.hbm %s1541_s18, 128  ;;  %s1123_s29 = scalar_lea.hbm %s1592_s7, 512 }
 0x3e2   : > { %p1120_p1 = scmp.ne.s32.totalorder %s1541_s18, %s1119_s3  ;;  %p1124_p12 = scmp.lt.u32.totalorder %s1541_s18, %s1592_s7 }
 0x3e3   : > { %p1125_p6 = scmp.lt.u32.totalorder %s1123_s29, %s1119_s3  ;;  %p1127_p0 = scmp.lt.u32.totalorder %s1119_s3, %s1541_s18 }
 0x3e4   : > { %p1121_p8 = pnand %p1120_p1, %p1617_p4 }
 0x3e5   : > { %p1126_p10 = por %p1125_p6, %p1124_p12 }
 0x3e6   : > { %p1122_p13 = pneg %p1121_p8 }
 0x3e7   : > { %p1128_p5 = por %p1127_p0, %p1126_p10 }
 0x3e9   : > { %p1129_p7 = pnand %p1128_p5, %p1122_p13 }
 0x3eb   : > { %1132 = shalt.err (!%p1129_p7)
}
 0x3ec   : > { %866 = dma.vmem_to_hbm [thread:$0]  (%p1617_p4), %s1543_s26, 128, %s1541_s18, %s638_s0  }
 0x3ed PF: > { %p896_p2 = scmp.ge.s32.totalorder %s1185_s14, 2  ;;  %s663_s4 = sand.u32 1, %s1173_s11  }
 0x3ee   : > { %p1618_p11 = scmp.ne.s32.totalorder %s1601_s17, 0  ;;  %s664_s25 = scalar_lea.sflag [#allocation6], %s663_s4 }
 0x3f0   : > { %p886_p3 = pnand %p896_p2, %p1618_p11 }
 0x3f2   : > { %1168 = dma.done.wait (!%p886_p3), %s664_s25, 128  }
 0x3f3   : > { %1170 = vsyncadd (!%p886_p3), %s664_s25, 4294967168  ;;  %p28_p9 = scmp.ge.s32.totalorder %s1391_s8, 6   ;;  %s1619_s11 = smov %s1177_s12 }
 0x3f4   : > { %s1620_s12 = smov %s1181_s13  ;;  %s1621_s13 = smov %s1401_s27 }
 0x3f5   : > { %s1622_s14 = smov %s1391_s8  ;;  %30 = sbr.rel (!%p28_p9) target bundleno = 21 (0x15), region = 114 }
 0x3fc   :  { %669 = vsyncpa [#allocation5], 1 }
 0x3fd   :  { %671 = vsyncpa [#allocation5 + $0x1], 1 }
 0x3fe   :  { %672 = vsyncpa [#allocation8], 1 }
 0x3ff   :  { %674 = vsyncpa [#allocation8 + $0x1], 1 }
 0x400   :  { %675 = vsyncpa [#allocation11], 1 }
 0x401   :  { %676 = vsyncpa [#allocation6], 1 }
 0x402   :  { %678 = vsyncpa [#allocation6 + $0x1], 1 }

</bundles_post_ra>
